<compile_context>
chip_gen: v7x
topology: tpu7x:2x2x1
jax: 0.10.0
libtpu: 0.0.40
codegen_flags: <defaults>
</compile_context>

<pallas_src>
import functools

import jax
import jax.numpy as jnp
from jax.experimental import pallas as pl
from jax.experimental.pallas import tpu as pltpu

_SUBLANE = 8


def _vmem_budget_and_limit():
    """Generation-aware double-buffered input budget and scoped-VMEM limit."""
    try:
        cap = int(pltpu.get_tpu_info().vmem_capacity_bytes)
    except Exception:  # not queryable -> assume smallest (v7x-like) VMEM
        cap = 64 * 1024 * 1024
    if cap >= 128 * 1024 * 1024:
        # v5e / v6e: 128 MiB physical VMEM -> large, fully pipelined tiles.
        return 40 * 1024 * 1024, 64 * 1024 * 1024
    # v7x: only 64 MiB per TensorCore -> smaller budget, keep double-buffering.
    return 28 * 1024 * 1024, 48 * 1024 * 1024


def _choose_tile_s(S, T, Ds, Da, itemsize, budget_bytes):
    """Largest sublane-legal tile (multiple of 8 trajectories, or == S) whose
    double-buffered state+action footprint fits the VMEM budget."""
    bytes_per_traj = 2 * T * (Ds + Da) * itemsize  # x2: double buffering
    max_tile = max(1, budget_bytes // bytes_per_traj)
    if max_tile >= S:
        return S  # whole problem fits in one (or the full-S) tile
    tile = (max_tile // _SUBLANE) * _SUBLANE
    tile = max(tile, _SUBLANE)      # never fall back to an over-budget full S
    return min(tile, S)             # tile == S is always a legal block shape


def _rw_quad_kernel(states_ref, actions_ref, w_ref, b_ref, invvar_ref, out_ref,
                    *, tile_s, traj_len):
    # Policy mean on the MXU: (tile_s*T, Ds) @ (Ds, Da), f32 accumulate.
    mean = jnp.dot(states_ref[...], w_ref[...],
                   preferred_element_type=jnp.float32)
    mean = mean + b_ref[...].astype(jnp.float32)

    diff = actions_ref[...].astype(jnp.float32) - mean          # (tile_s*T, Da)

    # Mahalanobis term on the (otherwise idle) MXU:
    #   (tile_s*T, Da) @ (Da, 1) -> (tile_s*T, 1)
    quad = jnp.dot(diff * diff, invvar_ref[...].astype(jnp.float32),
                   preferred_element_type=jnp.float32)

    # Per-trajectory sum over the T steps (tiny f32 column; small relayout,
    # off the HBM-bound critical path).
    out_ref[...] = jnp.sum(quad.reshape(tile_s, traj_len), axis=-1,
                           keepdims=True)


def rw_objective(states, actions, rewards, W, b, log_std, *, tile_s=None):
    """RW objective (no-buffer branch): Pallas kernel for the per-trajectory
    Gaussian quadratic form, tiny softmax/dot epilogue in plain XLA."""
    S, T, Ds = states.shape
    Da = W.shape[1]

    # Free row-major flattens; the big tensors stay UNPADDED.
    states2 = states.reshape(S * T, Ds)
    actions2 = actions.reshape(S * T, Da)
    b2 = jnp.asarray(b).reshape(1, Da)
    log_std1 = jnp.asarray(log_std).reshape(Da)
    inv_var_col = jnp.exp(-2.0 * log_std1).astype(jnp.float32).reshape(Da, 1)

    itemsize = jnp.dtype(states2.dtype).itemsize
    budget, vmem_limit = _vmem_budget_and_limit()
    if tile_s is None:
        tile_s = _choose_tile_s(S, T, Ds, Da, itemsize, budget)
    num_blocks = pl.cdiv(S, tile_s)
    s_pad = num_blocks * tile_s  # ragged tail rows are garbage and sliced off

    kernel = functools.partial(_rw_quad_kernel, tile_s=tile_s, traj_len=T)

    # True (unpadded) cost estimate.
    flops = 2 * S * T * Ds * Da + 2 * S * T * Da + 3 * S * T * Da
    bytes_accessed = (itemsize * S * T * (Ds + Da)
                      + 4 * (Ds * Da + 2 * Da) + 4 * S)
    cost = pl.CostEstimate(flops=int(flops), transcendentals=0,
                           bytes_accessed=int(bytes_accessed))

    quad_sums = pl.pallas_call(
        kernel,
        out_shape=jax.ShapeDtypeStruct((s_pad, 1), jnp.float32),
        grid_spec=pltpu.PrefetchScalarGridSpec(
            num_scalar_prefetch=0,
            grid=(num_blocks,),
            in_specs=[
                pl.BlockSpec((tile_s * T, Ds), lambda i: (i, 0)),   # states
                pl.BlockSpec((tile_s * T, Da), lambda i: (i, 0)),   # actions
                pl.BlockSpec((Ds, Da), lambda i: (0, 0)),           # W
                pl.BlockSpec((1, Da), lambda i: (0, 0)),            # b
                pl.BlockSpec((Da, 1), lambda i: (0, 0)),            # inv_var col
            ],
            out_specs=pl.BlockSpec((tile_s, 1), lambda i: (i, 0)),
        ),
        compiler_params=pltpu.CompilerParams(
            # S tiles are independent -> parallel (uses both TCs on v7x).
            dimension_semantics=("parallel",),
            vmem_limit_bytes=vmem_limit,
        ),
        cost_estimate=cost,
    )(states2, actions2, W, b2, inv_var_col)

    quad_sums = quad_sums[:S, 0]                                  # (S,)

    # Tiny length-S epilogue in plain XLA (negligible vs. kernel HBM traffic).
    log_norm = jnp.sum(log_std1) + 0.5 * Da * jnp.log(2.0 * jnp.pi)
    score = -0.5 * quad_sums - T * log_norm                       # (S,)
    R = jnp.sum(rewards.astype(jnp.float32), axis=-1)             # (S,)
    iw = jax.nn.softmax(R)
    return -jnp.dot(iw, score)


def rw_objective_ref(states, actions, rewards, W, b, log_std):
    """Pure-JAX reference for verification."""
    Da = W.shape[1]
    mean = jnp.einsum('std,da->sta', states, W) + jnp.asarray(b).reshape(1, 1, Da)
    inv_var = jnp.exp(-2.0 * jnp.asarray(log_std).reshape(Da))
    diff = actions - mean
    quad = jnp.sum(diff * diff * inv_var, axis=-1)
    log_norm = jnp.sum(log_std) + 0.5 * Da * jnp.log(2.0 * jnp.pi)
    logp = -0.5 * quad - log_norm
    score = jnp.sum(logp, axis=-1)
    R = jnp.sum(rewards, axis=-1)
    iw = jax.nn.softmax(R)
    return -jnp.dot(iw, score)


if __name__ == "__main__":
    # Small shapes implied by the module: sample_size trajectories of
    # trajectory_length steps.
    S, T, Ds, Da = 16, 8, 32, 16

    key = jax.random.PRNGKey(0)
    k1, k2, k3, k4, k5 = jax.random.split(key, 5)

    states = jax.random.normal(k1, (S, T, Ds), dtype=jnp.float32)
    actions = jax.random.normal(k2, (S, T, Da), dtype=jnp.float32)
    rewards = jax.random.normal(k3, (S, T), dtype=jnp.float32)

    W = jax.random.normal(k4, (Ds, Da), dtype=jnp.float32) * 0.1
    b = jax.random.normal(k5, (1, Da), dtype=jnp.float32) * 0.01
    log_std = jnp.full((1, Da), -0.5, dtype=jnp.float32)

    loss_ref = rw_objective_ref(states, actions, rewards, W, b, log_std)

    # Multi-tile path (tile_s=8 -> 2-step parallel grid).
    loss = rw_objective(states, actions, rewards, W, b, log_std, tile_s=8)
    jax.block_until_ready(loss)
    assert jnp.allclose(loss, loss_ref, rtol=1e-4, atol=1e-4), (loss, loss_ref)

    # Auto tile selection (single full-S tile on these small shapes).
    loss_auto = rw_objective(states, actions, rewards, W, b, log_std)
    jax.block_until_ready(loss_auto)
    assert jnp.allclose(loss_auto, loss_ref, rtol=1e-4, atol=1e-4), (
        loss_auto, loss_ref)

    print("KERNEL_OK")
</pallas_src>

<mosaic_0001>
module attributes {stable_mosaic.version = 11 : i64} {
  func.func @_rw_quad_kernel(%arg0: i32, %arg1: memref<64x32xf32, #tpu.memory_space<vmem>>, %arg2: memref<64x16xf32, #tpu.memory_space<vmem>>, %arg3: memref<32x16xf32, #tpu.memory_space<vmem>>, %arg4: memref<1x16xf32, #tpu.memory_space<vmem>>, %arg5: memref<16x1xf32, #tpu.memory_space<vmem>>, %arg6: memref<8x1xf32, #tpu.memory_space<vmem>>) attributes {dimension_semantics = [#tpu.dimension_semantics<parallel>], iteration_bounds = array<i64: 2>, scalar_prefetch = 0 : i64, scratch_operands = 0 : i64, tpu.core_type = #tpu.core_type<tc>, window_params = [{transform_indices = @transform_0, window_bounds = array<i64: 64, 32>}, {transform_indices = @transform_1, window_bounds = array<i64: 64, 16>}, {pipeline_mode = #tpu.pipeline_mode<synchronous>, transform_indices = @transform_2, window_bounds = array<i64: 32, 16>}, {pipeline_mode = #tpu.pipeline_mode<synchronous>, transform_indices = @transform_3, window_bounds = array<i64: 1, 16>}, {pipeline_mode = #tpu.pipeline_mode<synchronous>, transform_indices = @transform_4, window_bounds = array<i64: 16, 1>}, {transform_indices = @transform_5, window_bounds = array<i64: 8, 1>}]} {
    %c0 = arith.constant 0 : index
    %c0_0 = arith.constant 0 : index
    %0 = vector.load %arg1[%c0, %c0_0] : memref<64x32xf32, #tpu.memory_space<vmem>>, vector<64x32xf32>
    %c0_1 = arith.constant 0 : index
    %c0_2 = arith.constant 0 : index
    %1 = vector.load %arg3[%c0_1, %c0_2] : memref<32x16xf32, #tpu.memory_space<vmem>>, vector<32x16xf32>
    %cst = arith.constant dense<0.000000e+00> : vector<64x16xf32>
    %2 = tpu.matmul %0, %1, %cst {dimension_numbers = #tpu.dot_dimension_numbers<[1], [0], [0], [1], [0, 0, 1, 1], [], []>} : vector<64x32xf32>, vector<32x16xf32>, vector<64x16xf32> -> vector<64x16xf32>
    %c0_3 = arith.constant 0 : index
    %c0_4 = arith.constant 0 : index
    %3 = vector.load %arg4[%c0_3, %c0_4] : memref<1x16xf32, #tpu.memory_space<vmem>>, vector<1x16xf32>
    %4 = vector.broadcast %3 : vector<1x16xf32> to vector<64x16xf32>
    %5 = arith.addf %2, %4 : vector<64x16xf32>
    %c0_5 = arith.constant 0 : index
    %c0_6 = arith.constant 0 : index
    %6 = vector.load %arg2[%c0_5, %c0_6] : memref<64x16xf32, #tpu.memory_space<vmem>>, vector<64x16xf32>
    %7 = arith.subf %6, %5 : vector<64x16xf32>
    %8 = arith.mulf %7, %7 : vector<64x16xf32>
    %c0_7 = arith.constant 0 : index
    %c0_8 = arith.constant 0 : index
    %9 = vector.load %arg5[%c0_7, %c0_8] : memref<16x1xf32, #tpu.memory_space<vmem>>, vector<16x1xf32>
    %cst_9 = arith.constant dense<0.000000e+00> : vector<64x1xf32>
    %10 = tpu.matmul %8, %9, %cst_9 {dimension_numbers = #tpu.dot_dimension_numbers<[1], [0], [0], [1], [0, 0, 1, 1], [], []>} : vector<64x16xf32>, vector<16x1xf32>, vector<64x1xf32> -> vector<64x1xf32>
    %11 = vector.shape_cast %10 : vector<64x1xf32> to vector<8x8xf32>
    %cst_10 = arith.constant dense<0.000000e+00> : vector<8xf32>
    %12 = vector.multi_reduction <add>, %11, %cst_10 [1] : vector<8x8xf32> to vector<8xf32>
    %13 = vector.shape_cast %12 : vector<8xf32> to vector<8x1xf32>
    %c0_11 = arith.constant 0 : index
    %c0_12 = arith.constant 0 : index
    %14 = vector.load %arg6[%c0_11, %c0_12] : memref<8x1xf32, #tpu.memory_space<vmem>>, vector<8x1xf32>
    tpu.vector_store %arg6[%c0_11, %c0_12], %13 {strides = array<i32>} : memref<8x1xf32, #tpu.memory_space<vmem>>, vector<8x1xf32>,
    return
  }
  func.func @transform_0(%arg0: i32) -> (i32, i32) {
    %c0_i32 = arith.constant 0 : i32
    %c0_i32_0 = arith.constant 0 : i32
    return %arg0, %c0_i32 : i32, i32
  }
  func.func @transform_1(%arg0: i32) -> (i32, i32) {
    %c0_i32 = arith.constant 0 : i32
    %c0_i32_0 = arith.constant 0 : i32
    return %arg0, %c0_i32 : i32, i32
  }
  func.func @transform_2(%arg0: i32) -> (i32, i32) {
    %c0_i32 = arith.constant 0 : i32
    %c0_i32_0 = arith.constant 0 : i32
    %c0_i32_1 = arith.constant 0 : i32
    return %c0_i32, %c0_i32_0 : i32, i32
  }
  func.func @transform_3(%arg0: i32) -> (i32, i32) {
    %c0_i32 = arith.constant 0 : i32
    %c0_i32_0 = arith.constant 0 : i32
    %c0_i32_1 = arith.constant 0 : i32
    return %c0_i32, %c0_i32_0 : i32, i32
  }
  func.func @transform_4(%arg0: i32) -> (i32, i32) {
    %c0_i32 = arith.constant 0 : i32
    %c0_i32_0 = arith.constant 0 : i32
    %c0_i32_1 = arith.constant 0 : i32
    return %c0_i32, %c0_i32_0 : i32, i32
  }
  func.func @transform_5(%arg0: i32) -> (i32, i32) {
    %c0_i32 = arith.constant 0 : i32
    %c0_i32_0 = arith.constant 0 : i32
    return %arg0, %c0_i32 : i32, i32
  }
}

</mosaic_0001>

<bundles_post_ra>
// kernel: tpu_custom_call.1
= control target key start
LH: loop header
LB: loop body
LE: loop exit
PB: predicated region body
PF: predicated region fallthrough
CT: control target
= control target key end

     0   :  { %s853_s18 = smov 0   ;;  %s928_s0 = inlined_call_operand.vmem [shape: f32[128,32], index: 0, kind: input, shape index: {}]   ;;  %s929_s1 = inlined_call_operand.vmem [shape: f32[128,16], index: 1, kind: input, shape index: {}]   ;;  %s930_s2 = inlined_call_operand.vmem [shape: f32[32,16], index: 2, kind: input, shape index: {}]   ;;  %s931_s3 = inlined_call_operand.vmem [shape: f32[1,16], index: 3, kind: input, shape index: {}]   ;;  %s932_s4 = inlined_call_operand.vmem [shape: f32[16,1], index: 4, kind: input, shape index: {}]   ;;  %s933_s5 = inlined_call_operand.vmem [shape: f32[16,1], index: 5, kind: output, shape index: {}]  }
   0x1 LB: > { %s859_s19 = sadd.s32 4294967295, %s820_s18   ;;  %p708_p0 = scmp.ge.s32.totalorder %s820_s18, 1  ;;  %s820_s18 = sphi %s853_s18, %s15_s18  }
   0x2   : > { %p199_p1 = scmp.lt.s32.totalorder %s820_s18, 3 }
   0x4   : > { %p200_p2 = pnand %p708_p0, %p199_p1 }
   0x5   : > { %v255_v0 = vld [vmem:[%s930_s2] sm:$0xff] (!%p200_p2)  ;;  %v256_v1 = vld [vmem:[%s930_s2 + $0x8] sm:$0xff] (!%p200_p2)  ;;  %v257_v2 = vld [vmem:[%s930_s2 + $0x10] sm:$0xff] (!%p200_p2)  ;;  %s709_s26 = sshll.u32 (!%p200_p2), %s859_s19, 3  ;;  %vm266_vm0 = vcmask (!%p200_p2), 261120   ;;  %v822_v17 = vmov (!%p200_p2), 0  }
   0x6   : > { %203 = sbr.rel (%p200_p2) target bundleno = 741 (0x2e5), region = 40  ;;  %v791_v3 = vpack.c.bf16 (!%p200_p2), %v256_v1, %v255_v0  ;;  %v258_v4 = vld [vmem:[%s930_s2 + $0x18] sm:$0xff] (!%p200_p2)  ;;  %p232_p3 = scmp.lt.s32.totalorder (!%p200_p2), %s709_s26, 15  ;;  %v420_v14 = vld [vmem:[%s932_s4] sm:$0xff] (!%p200_p2)  ;;  %v421_v15 = vld [vmem:[%s932_s4 + $0x8] sm:$0xff] (!%p200_p2)  ;;  %812 = vset.pattern.permute.xlu0 (!%p200_p2), %v822_v17  ;;  %813 = vset.pattern.permute.xlu1 (!%p200_p2), %v822_v17  ;;  %vm422_vm1 = vcmask (!%p200_p2), 130048  }
   0x7   : > { %v795_v5 = vpack.c.bf16 (!%p200_p2), %v258_v4, %v257_v2  ;;  %v799_v16 = vpack.c.bf16 (!%p200_p2), %v421_v15, %v420_v14  ;;  %v714_v18 = vld [vmem:[%s931_s3] ss:$0 sm:$0xff] (!%p200_p2)  ;;  %vm618_vm2 = vcmask (!%p200_p2), 1041409   ;;  %vm620_vm3 = vcmask (!%p200_p2), 1042434   ;;  %p243_p4 = scmp.lt.s32.totalorder (!%p200_p2), %s859_s19, 1 }
   0x8   : > { %792 = vmatprep.subr.bf16.mxu0 (!%p200_p2), %v791_v3  ;;  %vm622_vm4 = vcmask (!%p200_p2), 1043459   ;;  %vm624_vm5 = vcmask (!%p200_p2), 1044484   ;;  %vm626_vm6 = vcmask (!%p200_p2), 1045509   ;;  %vm628_vm7 = vcmask (!%p200_p2), 1046534  }
   0x9   : > { %794 = vmatpush3.bf16.msra.mxu0 (!%p200_p2), %v791_v3  ;;  %800 = vmatprep.subr.bf16.mxu1 (!%p200_p2), %v799_v16  ;;  %v584_v3 = vlaneseq (!%p200_p2)  ;;  %vm630_vm8 = vcmask (!%p200_p2), 1047559   ;;  %vm633_vm9 = vcmask (!%p200_p2), 64512   ;;  %vm637_vm10 = vcmask (!%p200_p2), 7168  }
   0xa   : > { %796 = vmatprep.subr.bf16.mxu0 (!%p200_p2), %v795_v5  ;;  %802 = vmatpush3.bf16.msra.mxu1 (!%p200_p2), %v799_v16 }
   0xb   : > { %v585_v4 = vand.u32 (!%p200_p2), 127, %v584_v3 }
   0xd   : > { %s935_s26 = smov (!%p232_p3, %s709_s26), 15  ;;  %798 = vmatpush3.bf16.msra.mxu0 %v795_v5  ;;  %v587_v5 = vshrl.u32 %v584_v3, 7  ;;  %s937_s19 = smov (!%p243_p4, %s859_s19), 1 }
   0xe   : > { %s710_s29 = sshll.u32 %s935_s26, 3  ;;  %s713_s17 = sshll.u32 %s937_s19, 3 }
   0xf   : > { %s235_s7 = scalar_lea.vmem %s928_s0, %s710_s29  ;;  %s899_s14 = scalar_lea.vmem %s929_s1, %s710_s29 }
  0x10   : > { %v247_v6 = vld [vmem:[%s235_s7] sm:$0xff]  ;;  %v248_v7 = vld [vmem:[%s235_s7 + $0x8] sm:$0xff]  ;;  %v249_v8 = vld [vmem:[%s235_s7 + $0x10] sm:$0xff]  ;;  %s246_s22 = scalar_lea.vmem %s933_s5, %s713_s17 }
  0x11   : > { %763 = vmatprep.mubr.msk.f32.mxu0 %vm266_vm0, %v247_v6  ;;  %v250_v9 = vld [vmem:[%s235_s7 + $0x18] sm:$0xff]  ;;  %v251_v10 = vld [vmem:[%s235_s7 + $0x20] sm:$0xff]  ;;  %v252_v11 = vld [vmem:[%s235_s7 + $0x28] sm:$0xff] }
  0x12   : > { %764 = vmatmul.mubr.msk.f32.vlgmr.msra.gmra.mrb[0].mxu0 %vm266_vm0, %v248_v7  ;;  %v253_v12 = vld [vmem:[%s235_s7 + $0x30] sm:$0xff]  ;;  %v254_v13 = vld [vmem:[%s235_s7 + $0x38] sm:$0xff]  ;;  %v397_v20 = vld [vmem:[%s899_s14 + $0x8] sm:$0xff]  ;;  %v588_v7 = vsub.s32 %v585_v4, %v587_v5 }
  0x13   : > { %766 = vmatprep.mubr.msk.f32.mxu0 %vm266_vm0, %v249_v8  ;;  %v396_v23 = vld [vmem:[%s899_s14] sm:$0xff]  ;;  %v399_v27 = vld [vmem:[%s899_s14 + $0x18] sm:$0xff]  ;;  %v398_v31 = vld [vmem:[%s899_s14 + $0x10] sm:$0xff] }
  0x14   : > { %v401_v38 = vld [vmem:[%s899_s14 + $0x28] sm:$0xff]  ;;  %v400_v41 = vld [vmem:[%s899_s14 + $0x20] sm:$0xff]  ;;  %v403_v48 = vld [vmem:[%s899_s14 + $0x38] sm:$0xff] }
  0x15   : > { %v402_v52 = vld [vmem:[%s899_s14 + $0x30] sm:$0xff] }
  0x16   : > { %767 = vmatmul.mubr.msk.f32.gmra.mrb[2].mxu0 %vm266_vm0, %v250_v9 }
  0x17   : > { %769 = vmatprep.mubr.msk.f32.mxu0 %vm266_vm0, %v251_v10 }
  0x1a   : > { %770 = vmatmul.mubr.msk.f32.gmra.mrb[4].mxu0 %vm266_vm0, %v252_v11 }
  0x1b   : > { %772 = vmatprep.mubr.msk.f32.mxu0 %vm266_vm0, %v253_v12 }
  0x1e   : > { %773 = vmatmul.mubr.msk.f32.gmra.mrb[6].mxu0 %vm266_vm0, %v254_v13 }
  0xe5   : > { %v765_v19 = vpop.f32.mrb[0].mxu0 }
  0xe6   : > { %v363_v21 = vadd.f32 %v765_v19, %v714_v18  ;;  %v357_v22 = vpop.f32.mrb[1].mxu0 }
  0xe7   : > { %v358_v24 = vadd.f32 %v714_v18, %v357_v22 }
  0xe8   : > { %v405_v25 = vsub.f32 %v397_v20, %v363_v21 }
  0xe9   : > { %v768_v26 = vpop.f32.mrb[2].mxu0  ;;  %v404_v28 = vsub.f32 %v396_v23, %v358_v24 }
  0xea   : > { %v373_v29 = vadd.f32 %v768_v26, %v714_v18  ;;  %v367_v30 = vpop.f32.mrb[3].mxu0  ;;  %v413_v34 = vmul.f32 %v405_v25, %v405_v25 }
  0xeb   : > { %v368_v32 = vadd.f32 %v714_v18, %v367_v30  ;;  %v412_v33 = vmul.f32 %v404_v28, %v404_v28 }
  0xec   : > { %v407_v35 = vsub.f32 %v399_v27, %v373_v29 }
  0xed   : > { %v406_v36 = vsub.f32 %v398_v31, %v368_v32  ;;  %v771_v37 = vpop.f32.mrb[4].mxu0  ;;  %779 = vmatprep.mubr.msk.f32.mxu1 %vm422_vm1, %v412_v33 }
  0xee   : > { %v383_v39 = vadd.f32 %v771_v37, %v714_v18  ;;  %v377_v40 = vpop.f32.mrb[5].mxu0  ;;  %780 = vmatmul.mubr.msk.f32.vlgmr.msra.gmra.mrb[0].mxu1 %vm422_vm1, %v413_v34  ;;  %v415_v44 = vmul.f32 %v407_v35, %v407_v35 }
  0xef   : > { %v414_v42 = vmul.f32 %v406_v36, %v406_v36  ;;  %v378_v43 = vadd.f32 %v714_v18, %v377_v40 }
  0xf0   : > { %v409_v45 = vsub.f32 %v401_v38, %v383_v39 }
  0xf1   : > { %v408_v46 = vsub.f32 %v400_v41, %v378_v43  ;;  %v774_v47 = vpop.f32.mrb[6].mxu0  ;;  %782 = vmatprep.mubr.msk.f32.mxu1 %vm422_vm1, %v414_v42 }
  0xf2   : > { %v417_v49 = vmul.f32 %v409_v45, %v409_v45  ;;  %v393_v50 = vadd.f32 %v774_v47, %v714_v18  ;;  %v387_v51 = vpop.f32.mrb[7].mxu0  ;;  %783 = vmatmul.mubr.msk.f32.gmra.mrb[2].mxu1 %vm422_vm1, %v415_v44 }
  0xf3   : > { %v416_v53 = vmul.f32 %v408_v46, %v408_v46  ;;  %v388_v54 = vadd.f32 %v714_v18, %v387_v51 }
  0xf4   : > { %v411_v55 = vsub.f32 %v403_v48, %v393_v50 }
  0xf5   : > { %v410_v56 = vsub.f32 %v402_v52, %v388_v54  ;;  %785 = vmatprep.mubr.msk.f32.mxu1 %vm422_vm1, %v416_v53 }
  0xf6   : > { %v419_v57 = vmul.f32 %v411_v55, %v411_v55  ;;  %786 = vmatmul.mubr.msk.f32.gmra.mrb[4].mxu1 %vm422_vm1, %v417_v49 }
  0xf7   : > { %v418_v58 = vmul.f32 %v410_v56, %v410_v56 }
  0xf9   : > { %788 = vmatprep.mubr.msk.f32.mxu1 %vm422_vm1, %v418_v58 }
  0xfa   : > { %789 = vmatmul.mubr.msk.f32.gmra.mrb[6].mxu1 %vm422_vm1, %v419_v57 }
 0x1c1   : > { %v781_v59 = vpop.f32.mrb[0].mxu1 }
 0x1c2   : > { %564 = vperm.xlu0 %812, %v781_v59   ;;  %v513_v60 = vpop.f32.mrb[1].mxu1 }
 0x1c5   : > { %v784_v61 = vpop.f32.mrb[2].mxu1 }
 0x1c6   : > { %561 = vperm.xlu0 %812, %v513_v60   ;;  %570 = vperm.xlu1 %813, %v784_v61   ;;  %v523_v62 = vpop.f32.mrb[3].mxu1 }
 0x1c9   : > { %v787_v63 = vpop.f32.mrb[4].mxu1 }
 0x1ca   : > { %567 = vperm.xlu1 %813, %v523_v62   ;;  %v533_v0 = vpop.f32.mrb[5].mxu1 }
 0x1cb   : > { %573 = vperm.xlu0 %812, %v533_v0  }
 0x1cd   : > { %v790_v1 = vpop.f32.mrb[6].mxu1 }
 0x1ce   : > { %576 = vperm.xlu1 %813, %v787_v63   ;;  %v543_v2 = vpop.f32.mrb[7].mxu1 }
 0x1cf   : > { %579 = vperm.xlu0 %812, %v543_v2  }
 0x1d2   : > { %582 = vperm.xlu1 %813, %v790_v1  }
 0x241   : > { %v565_v6 = vpop.permute.xlu0 %564 }
 0x242   : > { %v593_v11 = vrot.slane %v565_v6, %v588_v7 }
 0x245   : > { %v562_v8 = vpop.permute.xlu0 %561  ;;  %v571_v9 = vpop.permute.xlu1 %570 }
 0x246   : > { %v589_v10 = vrot.slane %v562_v8, %v588_v7  ;;  %v601_v16 = vrot.slane %v571_v9, %v588_v7 }
 0x248   : > { %v619_v15 = vsel %vm618_vm2, %v593_v11, %v589_v10 }
 0x249   : > { %v568_v12 = vpop.permute.xlu1 %567 }
 0x24a   : > { %v597_v13 = vrot.slane %v568_v12, %v588_v7  ;;  %v574_v14 = vpop.permute.xlu0 %573 }
 0x24b   : > { %v605_v17 = vrot.slane %v574_v14, %v588_v7 }
 0x24c   : > { %v621_v18 = vsel %vm620_vm3, %v597_v13, %v619_v15 }
 0x24d   : > { %v623_v19 = vsel %vm622_vm4, %v601_v16, %v621_v18  ;;  %v577_v20 = vpop.permute.xlu1 %576 }
 0x24e   : > { %v625_v21 = vsel %vm624_vm5, %v605_v17, %v623_v19  ;;  %v609_v22 = vrot.slane %v577_v20, %v588_v7  ;;  %v580_v23 = vpop.permute.xlu0 %579 }
 0x24f   : > { %v613_v24 = vrot.slane %v580_v23, %v588_v7 }
 0x250   : > { %v627_v25 = vsel %vm626_vm6, %v609_v22, %v625_v21 }
 0x251   : > { %v583_v26 = vpop.permute.xlu1 %582  ;;  %v629_v28 = vsel %vm628_vm7, %v613_v24, %v627_v25 }
 0x252   : > { %v617_v27 = vrot.slane %v583_v26, %v588_v7 }
 0x254   : > { %v631_v29 = vsel %vm630_vm8, %v617_v27, %v629_v28 }
 0x255   : > { %v634_v30 = vsel %vm633_vm9, %v631_v29, 0.0 }
 0x256   : > { %635 = vadd.xlane.f32.xlu0 %v634_v30 }
 0x2e3   : > { %v636_v31 = vpop.xlane.xlu0 %635 }
 0x2e4   : > { %638 = vst.msk [vmem:[%s246_s22] sm:$0xff] %vm637_vm10, %v636_v31 }
 0x2e5 PF: > { %s15_s18 = sadd.s32 1, %s820_s18  }
 0x2e6   : > { %p12_p5 = scmp.ge.s32.totalorder %s15_s18, 4  }
 0x2e8   :  { %14 = sbr.rel (!%p12_p5) target bundleno = 1 (0x1), region = 73 }

</bundles_post_ra>
